<compile_context>
chip_gen: v5e
topology: v5e:2x2
jax: 0.10.0
libtpu: 0.0.40
codegen_flags: <defaults>
</compile_context>

<pallas_src>
import functools

import jax
import jax.numpy as jnp
from jax import lax
from jax.experimental import pallas as pl
from jax.experimental.pallas import tpu as pltpu

LOG_SIG_MAX = 2.0
LOG_SIG_MIN = -20.0


def _round_up(x, m):
    return (x + m - 1) // m * m


def gaussian_policy_kernel(x_ref, w1_ref, b1_ref, w2_ref, b2_ref,
                           wh_ref, bh_ref, out_ref, *, split):
    x = x_ref[...]
    # linear1 + ReLU
    h1 = jnp.dot(x, w1_ref[...], preferred_element_type=jnp.float32) + b1_ref[...]
    h1 = jnp.maximum(h1, 0.0)
    # linear2 + ReLU
    h2 = jnp.dot(h1, w2_ref[...], preferred_element_type=jnp.float32) + b2_ref[...]
    h2 = jnp.maximum(h2, 0.0)
    # fused heads: ONE matmul over [hidden, OUT_W]; mean occupies lanes
    # [0, split), log_std occupies lanes [split, OUT_W).  Clamp only the
    # log_std lanes (padded lanes hold 0; clamp(0)=0, sliced off by wrapper).
    y = jnp.dot(h2, wh_ref[...], preferred_element_type=jnp.float32) + bh_ref[...]
    lane = lax.broadcasted_iota(jnp.int32, y.shape, dimension=1)
    out_ref[...] = jnp.where(lane >= split,
                             jnp.clip(y, LOG_SIG_MIN, LOG_SIG_MAX),
                             y)


def pack_head_params(params):
    """Pack the mean / log_std head weights into a single lane-dense matrix.

    Call ONCE at init / param-update time (not inside the forward hot path).
    Adds keys: "wh" [H, OUT_W], "bh" [1, OUT_W], "head_split", "head_width".
    """
    H, A = params["wm"].shape
    if A <= 64:
        out_w, split = 128, 64                # both heads share one 128-lane vreg width
    else:
        split = _round_up(A, 128)
        out_w = 2 * split

    wh = jnp.zeros((H, out_w), jnp.float32)
    wh = wh.at[:, :A].set(params["wm"]).at[:, split:split + A].set(params["ws"])
    bh = jnp.zeros((1, out_w), jnp.float32)
    bh = bh.at[:, :A].set(params["bm"]).at[:, split:split + A].set(params["bs"])

    packed = dict(params)
    packed["wh"] = wh
    packed["bh"] = bh
    packed["head_split"] = split
    packed["head_width"] = out_w
    return packed


def gaussian_policy_forward(state, params, *, tb=None):
    """state: [B, num_inputs] f32.  params: dict from init_params + pack_head_params.

    Returns (mean, log_std), both f32 [B, num_actions].
    """
    if "wh" not in params:
        # Fallback (costs extra XLA launches per call) -- prefer pre-packing.
        params = pack_head_params(params)

    B, num_inputs = state.shape
    A = params["wm"].shape[1]
    split = params["head_split"]
    out_w = params["head_width"]

    # ---- batch tiling ----
    if tb is None:
        if B >= 2048:
            # ensure >= 2 grid steps so the "parallel" axis uses both TCs on v7x
            tb = min(1024, _round_up(pl.cdiv(B, 2), 8))
        else:
            tb = min(1024, _round_up(B, 8))
    tb = _round_up(max(tb, 8), 8)
    B_pad = _round_up(B, tb)
    if B_pad != B:
        state = jnp.pad(state, ((0, B_pad - B), (0, 0)))
    grid = (B_pad // tb,)

    args = (state,
            params["w1"], params["b1"],
            params["w2"], params["b2"],
            params["wh"], params["bh"])

    # Weights/biases: full-array blocks whose block index never changes, so
    # they are fetched once and stay VMEM-resident across grid steps.
    resident = lambda shape: pl.BlockSpec(shape, lambda i: (0, 0))

    in_specs = [
        pl.BlockSpec((tb, num_inputs), lambda i: (i, 0)),   # state: tiled on batch
        resident(params["w1"].shape),
        resident(params["b1"].shape),
        resident(params["w2"].shape),
        resident(params["b2"].shape),
        resident(params["wh"].shape),
        resident(params["bh"].shape),
    ]
    out_specs = pl.BlockSpec((tb, out_w), lambda i: (i, 0))
    out_shape = jax.ShapeDtypeStruct((B_pad, out_w), jnp.float32)

    # VMEM estimate: double-buffered state/out tiles + resident weights.
    weight_bytes = sum(int(a.size) * 4 for a in args[1:])
    step_bytes = 2 * (tb * num_inputs + tb * out_w) * 4
    vmem_needed = step_bytes + weight_bytes + (1 << 20)
    compiler_kwargs = dict(dimension_semantics=("parallel",))
    if vmem_needed > (32 << 20):
        compiler_kwargs["vmem_limit_bytes"] = min(vmem_needed, 64 << 20)

    out = pl.pallas_call(
        functools.partial(gaussian_policy_kernel, split=split),
        out_shape=out_shape,
        grid_spec=pltpu.PrefetchScalarGridSpec(
            num_scalar_prefetch=0,
            grid=grid,
            in_specs=in_specs,
            out_specs=out_specs,
        ),
        compiler_params=pltpu.CompilerParams(**compiler_kwargs),
    )(*args)

    mean = out[:B, :A]
    log_std = out[:B, split:split + A]
    return mean, log_std


def init_params(key, num_inputs, num_actions, hidden_dim):
    """Xavier-uniform weights (gain=1), zero biases, matching weights_init_ in
    the PyTorch module.  Weights stored as [in, out] (transpose of nn.Linear)."""
    def xavier(k, fan_in, fan_out):
        bound = jnp.sqrt(6.0 / (fan_in + fan_out))
        return jax.random.uniform(k, (fan_in, fan_out), jnp.float32,
                                  minval=-bound, maxval=bound)

    k1, k2, k3, k4 = jax.random.split(key, 4)
    return {
        "w1": xavier(k1, num_inputs, hidden_dim),
        "b1": jnp.zeros((1, hidden_dim), jnp.float32),
        "w2": xavier(k2, hidden_dim, hidden_dim),
        "b2": jnp.zeros((1, hidden_dim), jnp.float32),
        "wm": xavier(k3, hidden_dim, num_actions),
        "bm": jnp.zeros((1, num_actions), jnp.float32),
        "ws": xavier(k4, hidden_dim, num_actions),
        "bs": jnp.zeros((1, num_actions), jnp.float32),
    }


def reference_forward(state, p):
    h1 = jnp.maximum(state @ p["w1"] + p["b1"], 0.0)
    h2 = jnp.maximum(h1 @ p["w2"] + p["b2"], 0.0)
    mean = h2 @ p["wm"] + p["bm"]
    log_std = jnp.clip(h2 @ p["ws"] + p["bs"], LOG_SIG_MIN, LOG_SIG_MAX)
    return mean, log_std


if __name__ == "__main__":
    key = jax.random.PRNGKey(0)
    batch, num_inputs, num_actions, hidden_dim = 8, 16, 8, 32

    k_params, k_state = jax.random.split(key)
    params = init_params(k_params, num_inputs, num_actions, hidden_dim)
    # Pack the two head weights once, outside the forward hot path.
    params = pack_head_params(params)
    state = jax.random.normal(k_state, (batch, num_inputs), jnp.float32)

    mean, log_std = gaussian_policy_forward(state, params)
    jax.block_until_ready((mean, log_std))

    ref_mean, ref_log_std = reference_forward(state, params)
    assert mean.shape == (batch, num_actions)
    assert log_std.shape == (batch, num_actions)
    assert jnp.allclose(mean, ref_mean, atol=1e-5, rtol=1e-5)
    assert jnp.allclose(log_std, ref_log_std, atol=1e-5, rtol=1e-5)

    # TODO(synk): GaussianPolicy.sample() (rsample + tanh-squash log-prob) is a
    # distribution-sampling method outside the forward hot path; not kernelized.
    print("KERNEL_OK")
</pallas_src>

<mosaic_0001>
module attributes {stable_mosaic.version = 11 : i64} {
  func.func @gaussian_policy_kernel(%arg0: i32, %arg1: memref<8x16xf32, #tpu.memory_space<vmem>>, %arg2: memref<16x32xf32, #tpu.memory_space<vmem>>, %arg3: memref<1x32xf32, #tpu.memory_space<vmem>>, %arg4: memref<32x32xf32, #tpu.memory_space<vmem>>, %arg5: memref<1x32xf32, #tpu.memory_space<vmem>>, %arg6: memref<32x128xf32, #tpu.memory_space<vmem>>, %arg7: memref<1x128xf32, #tpu.memory_space<vmem>>, %arg8: memref<8x128xf32, #tpu.memory_space<vmem>>) attributes {dimension_semantics = [#tpu.dimension_semantics<parallel>], iteration_bounds = array<i64: 1>, scalar_prefetch = 0 : i64, scratch_operands = 0 : i64, tpu.core_type = #tpu.core_type<tc>, window_params = [{transform_indices = @transform_0, window_bounds = array<i64: 8, 16>}, {pipeline_mode = #tpu.pipeline_mode<synchronous>, transform_indices = @transform_1, window_bounds = array<i64: 16, 32>}, {pipeline_mode = #tpu.pipeline_mode<synchronous>, transform_indices = @transform_2, window_bounds = array<i64: 1, 32>}, {pipeline_mode = #tpu.pipeline_mode<synchronous>, transform_indices = @transform_3, window_bounds = array<i64: 32, 32>}, {pipeline_mode = #tpu.pipeline_mode<synchronous>, transform_indices = @transform_4, window_bounds = array<i64: 1, 32>}, {pipeline_mode = #tpu.pipeline_mode<synchronous>, transform_indices = @transform_5, window_bounds = array<i64: 32, 128>}, {pipeline_mode = #tpu.pipeline_mode<synchronous>, transform_indices = @transform_6, window_bounds = array<i64: 1, 128>}, {transform_indices = @transform_7, window_bounds = array<i64: 8, 128>}]} {
    %c0 = arith.constant 0 : index
    %c0_0 = arith.constant 0 : index
    %0 = vector.load %arg1[%c0, %c0_0] : memref<8x16xf32, #tpu.memory_space<vmem>>, vector<8x16xf32>
    %c0_1 = arith.constant 0 : index
    %c0_2 = arith.constant 0 : index
    %1 = vector.load %arg2[%c0_1, %c0_2] : memref<16x32xf32, #tpu.memory_space<vmem>>, vector<16x32xf32>
    %cst = arith.constant dense<0.000000e+00> : vector<8x32xf32>
    %2 = tpu.matmul %0, %1, %cst {dimension_numbers = #tpu.dot_dimension_numbers<[1], [0], [0], [1], [0, 0, 1, 1], [], []>} : vector<8x16xf32>, vector<16x32xf32>, vector<8x32xf32> -> vector<8x32xf32>
    %c0_3 = arith.constant 0 : index
    %c0_4 = arith.constant 0 : index
    %3 = vector.load %arg3[%c0_3, %c0_4] : memref<1x32xf32, #tpu.memory_space<vmem>>, vector<1x32xf32>
    %4 = vector.broadcast %3 : vector<1x32xf32> to vector<8x32xf32>
    %5 = arith.addf %2, %4 : vector<8x32xf32>
    %cst_5 = arith.constant 0.000000e+00 : f32
    %6 = vector.broadcast %cst_5 : f32 to vector<8x32xf32>
    %7 = arith.maximumf %5, %6 : vector<8x32xf32>
    %c0_6 = arith.constant 0 : index
    %c0_7 = arith.constant 0 : index
    %8 = vector.load %arg4[%c0_6, %c0_7] : memref<32x32xf32, #tpu.memory_space<vmem>>, vector<32x32xf32>
    %cst_8 = arith.constant dense<0.000000e+00> : vector<8x32xf32>
    %9 = tpu.matmul %7, %8, %cst_8 {dimension_numbers = #tpu.dot_dimension_numbers<[1], [0], [0], [1], [0, 0, 1, 1], [], []>} : vector<8x32xf32>, vector<32x32xf32>, vector<8x32xf32> -> vector<8x32xf32>
    %c0_9 = arith.constant 0 : index
    %c0_10 = arith.constant 0 : index
    %10 = vector.load %arg5[%c0_9, %c0_10] : memref<1x32xf32, #tpu.memory_space<vmem>>, vector<1x32xf32>
    %11 = vector.broadcast %10 : vector<1x32xf32> to vector<8x32xf32>
    %12 = arith.addf %9, %11 : vector<8x32xf32>
    %cst_11 = arith.constant 0.000000e+00 : f32
    %13 = vector.broadcast %cst_11 : f32 to vector<8x32xf32>
    %14 = arith.maximumf %12, %13 : vector<8x32xf32>
    %c0_12 = arith.constant 0 : index
    %c0_13 = arith.constant 0 : index
    %15 = vector.load %arg6[%c0_12, %c0_13] : memref<32x128xf32, #tpu.memory_space<vmem>>, vector<32x128xf32>
    %cst_14 = arith.constant dense<0.000000e+00> : vector<8x128xf32>
    %16 = tpu.matmul %14, %15, %cst_14 {dimension_numbers = #tpu.dot_dimension_numbers<[1], [0], [0], [1], [0, 0, 1, 1], [], []>} : vector<8x32xf32>, vector<32x128xf32>, vector<8x128xf32> -> vector<8x128xf32>
    %c0_15 = arith.constant 0 : index
    %c0_16 = arith.constant 0 : index
    %17 = vector.load %arg7[%c0_15, %c0_16] : memref<1x128xf32, #tpu.memory_space<vmem>>, vector<1x128xf32>
    %18 = vector.broadcast %17 : vector<1x128xf32> to vector<8x128xf32>
    %19 = arith.addf %16, %18 : vector<8x128xf32>
    %20 = tpu.iota {dimensions = array<i32: 1>} : vector<8x128xi32>
    %c64_i32 = arith.constant 64 : i32
    %21 = vector.broadcast %c64_i32 : i32 to vector<8x128xi32>
    %22 = arith.cmpi sge, %20, %21 : vector<8x128xi32>
    %cst_17 = arith.constant -2.000000e+01 : f32
    %cst_18 = arith.constant 2.000000e+00 : f32
    %23 = vector.broadcast %cst_17 : f32 to vector<8x128xf32>
    %24 = arith.maximumf %23, %19 : vector<8x128xf32>
    %25 = vector.broadcast %cst_18 : f32 to vector<8x128xf32>
    %26 = arith.minimumf %25, %24 : vector<8x128xf32>
    %27 = arith.select %22, %26, %19 : vector<8x128xi1>, vector<8x128xf32>
    %c0_19 = arith.constant 0 : index
    %c0_20 = arith.constant 0 : index
    %28 = vector.load %arg8[%c0_19, %c0_20] : memref<8x128xf32, #tpu.memory_space<vmem>>, vector<8x128xf32>
    tpu.vector_store %arg8[%c0_19, %c0_20], %27 {strides = array<i32>} : memref<8x128xf32, #tpu.memory_space<vmem>>, vector<8x128xf32>,
    return
  }
  func.func @transform_0(%arg0: i32) -> (i32, i32) {
    %c0_i32 = arith.constant 0 : i32
    %c0_i32_0 = arith.constant 0 : i32
    return %arg0, %c0_i32 : i32, i32
  }
  func.func @transform_1(%arg0: i32) -> (i32, i32) {
    %c0_i32 = arith.constant 0 : i32
    %c0_i32_0 = arith.constant 0 : i32
    %c0_i32_1 = arith.constant 0 : i32
    return %c0_i32, %c0_i32_0 : i32, i32
  }
  func.func @transform_2(%arg0: i32) -> (i32, i32) {
    %c0_i32 = arith.constant 0 : i32
    %c0_i32_0 = arith.constant 0 : i32
    %c0_i32_1 = arith.constant 0 : i32
    return %c0_i32, %c0_i32_0 : i32, i32
  }
  func.func @transform_3(%arg0: i32) -> (i32, i32) {
    %c0_i32 = arith.constant 0 : i32
    %c0_i32_0 = arith.constant 0 : i32
    %c0_i32_1 = arith.constant 0 : i32
    return %c0_i32, %c0_i32_0 : i32, i32
  }
  func.func @transform_4(%arg0: i32) -> (i32, i32) {
    %c0_i32 = arith.constant 0 : i32
    %c0_i32_0 = arith.constant 0 : i32
    %c0_i32_1 = arith.constant 0 : i32
    return %c0_i32, %c0_i32_0 : i32, i32
  }
  func.func @transform_5(%arg0: i32) -> (i32, i32) {
    %c0_i32 = arith.constant 0 : i32
    %c0_i32_0 = arith.constant 0 : i32
    %c0_i32_1 = arith.constant 0 : i32
    return %c0_i32, %c0_i32_0 : i32, i32
  }
  func.func @transform_6(%arg0: i32) -> (i32, i32) {
    %c0_i32 = arith.constant 0 : i32
    %c0_i32_0 = arith.constant 0 : i32
    %c0_i32_1 = arith.constant 0 : i32
    return %c0_i32, %c0_i32_0 : i32, i32
  }
  func.func @transform_7(%arg0: i32) -> (i32, i32) {
    %c0_i32 = arith.constant 0 : i32
    %c0_i32_0 = arith.constant 0 : i32
    return %arg0, %c0_i32 : i32, i32
  }
}

</mosaic_0001>

<bundles_post_ra>
// kernel: tpu_custom_call.1
= control target key start
LH: loop header
LB: loop body
LE: loop exit
PB: predicated region body
PF: predicated region fallthrough
CT: control target
= control target key end

     0   :  { %12 = vsyncpa [#allocation3], 0  ;;  %s422_s0 = inlined_call_operand.hbm [shape: f32[8,16], index: 0, kind: input, shape index: {}]   ;;  %s423_s1 = inlined_call_operand.hbm [shape: f32[16,32], index: 1, kind: input, shape index: {}]   ;;  %s424_s2 = inlined_call_operand.vmem [shape: f32[1,32], index: 2, kind: input, shape index: {}]   ;;  %s425_s3 = inlined_call_operand.hbm [shape: f32[32,32], index: 3, kind: input, shape index: {}]   ;;  %s426_s4 = inlined_call_operand.vmem [shape: f32[1,32], index: 4, kind: input, shape index: {}]   ;;  %s427_s5 = inlined_call_operand.hbm [shape: f32[32,128], index: 5, kind: input, shape index: {}]   ;;  %s428_s6 = inlined_call_operand.vmem [shape: f32[1,128], index: 6, kind: input, shape index: {}]   ;;  %s429_s7 = inlined_call_operand.hbm [shape: f32[8,128], index: 7, kind: output, shape index: {}]  }
   0x1   :  { %13 = vsyncpa [#allocation6], 0 }
   0x2   :  { %14 = vsyncpa [#allocation9], 0  ;;  %s31_s26 = sshll.u32 %s423_s1, 4  ;;  %s32_s26 = int_to_ptr.hbm [resolvable:$true] %s31_s26 }
   0x3   :  { %15 = vsyncpa [#allocation4], 0  ;;  %s351_s27 = smov [#allocation5]   ;;  %s21_s8 = sshll.u32 %s422_s0, 4  ;;  %s22_s8 = int_to_ptr.hbm [resolvable:$true] %s21_s8 }
   0x4   :  { %s33_s28 = sshll.u32 %s351_s27, 4  ;;  %s352_s9 = smov 128   ;;  %s34_s28 = int_to_ptr.vmem [resolvable:$true] %s33_s28 }
   0x5   :  { %s353_s10 = smov 8   ;;  %s354_s11 = smov [#allocation2]  }
   0x6   :  { %39 = dma.hbm_to_vmem [thread:$0]  %s32_s26, 256, %s34_s28, [#allocation6], %s352_s9, %s352_s9, %s353_s10  }
   0x7   :  { %s23_s12 = sshll.u32 %s354_s11, 4  ;;  %s46_s15 = sshll.u32 %s425_s3, 4  ;;  %s24_s12 = int_to_ptr.vmem [resolvable:$true] %s23_s12  ;;  %s47_s15 = int_to_ptr.hbm [resolvable:$true] %s46_s15 }
   0x8   :  { %26 = dma.hbm_to_vmem [thread:$0]  %s22_s8, 128, %s24_s12, [#allocation3]  }
   0x9   :  { %s61_s17 = sshll.u32 %s427_s5, 4  ;;  %s355_s18 = smov [#allocation7]   ;;  %s62_s17 = int_to_ptr.hbm [resolvable:$true] %s61_s17 }
   0xa   :  { %s48_s19 = sshll.u32 %s355_s18, 4  ;;  %s356_s0 = smov [#allocation8]   ;;  %s49_s19 = int_to_ptr.vmem [resolvable:$true] %s48_s19 }
   0xb   :  { %54 = dma.hbm_to_vmem [thread:$0]  %s47_s15, 512, %s49_s19, [#allocation6], %s352_s9, %s352_s9, %s353_s10  }
   0xc   :  { %s63_s20 = sshll.u32 %s356_s0, 4  ;;  %s64_s20 = int_to_ptr.vmem [resolvable:$true] %s63_s20 }
   0xd   :  { %69 = dma.hbm_to_vmem [thread:$0]  %s62_s17, 512, %s64_s20, [#allocation9], %s352_s9, %s352_s9, %s353_s10  }
   0xe   :  { %343 = dma.done.wait [#allocation3], 128  }
   0xf   :  { %344 = vsyncadd [#allocation3], 4294967168 }
  0x10   :  { %345 = dma.done.wait [#allocation6], 768  }
  0x11   :  { %346 = vsyncadd [#allocation6], 4294966528 }
  0x12   :  { %347 = dma.done.wait [#allocation9], 512  }
  0x13   :  { %348 = vsyncadd [#allocation9], 4294966784  ;;  %v90_v0 = vld [vmem:[#allocation5 + $0x8] sm:$0xff]  ;;  %v89_v1 = vld [vmem:[#allocation5] sm:$0xff]  ;;  %vm95_vm0 = vcmask 130048   ;;  %vm128_vm1 = vcmask 261120   ;;  %v184_v19 = vlaneseq }
  0x14   :  { %113 = vmatpush.msra.mxu0 %v90_v0  ;;  %v88_v2 = vld [vmem:[#allocation2] sm:$0xff]  ;;  %v123_v3 = vld [vmem:[#allocation7 + $0x18] sm:$0xff]  ;;  %v122_v4 = vld [vmem:[#allocation7 + $0x10] sm:$0xff]  ;;  %s357_s24 = smov [#allocation10]   ;;  %s198_s28 = sshll.u32 %s429_s7, 4  ;;  %s199_s28 = int_to_ptr.hbm [resolvable:$true] %s198_s28 }
  0x15   :  { %144 = vmatpush.msra.mxu1 %v123_v3  ;;  %v121_v5 = vld [vmem:[#allocation7 + $0x8] sm:$0xff]  ;;  %v120_v6 = vld [vmem:[#allocation7] sm:$0xff]  ;;  %v156_v7 = vld [vmem:[#allocation8 + $0x18] sm:$0xff]  ;;  %v185_v22 = vand.u32 127, %v184_v19  ;;  %s196_s25 = sshll.u32 %s357_s24, 4  ;;  %s197_s25 = int_to_ptr.vmem [resolvable:$true] %s196_s25 }
  0x16   :  { %114 = vmatpush.msra.mxu0 %v89_v1  ;;  %176 = vmatpush.msra.mxu2 %v156_v7  ;;  %v220_v8 = vld [vmem:[%s424_s2] ss:$0 sm:$0xff]  ;;  %v155_v12 = vld [vmem:[#allocation8 + $0x10] sm:$0xff]  ;;  %v153_v14 = vld [vmem:[#allocation8] sm:$0xff] }
  0x17   :  { %210 = vmatmul.msk.f32.vlgmr.msra.gmra.mxu0 %vm95_vm0, %v88_v2  ;;  %145 = vmatpush.msra.mxu1 %v122_v4  ;;  %v154_v13 = vld [vmem:[#allocation8 + $0x8] sm:$0xff]  ;;  %vm186_vm2 = vcmp.ge.s32.totalorder %v185_v22, 64 }
  0x18   :  { %177 = vmatpush.msra.mxu2 %v155_v12  ;;  %v221_v15 = vld [vmem:[%s426_s4] ss:$0 sm:$0xff] }
  0x19   :  { %146 = vmatpush.msra.mxu1 %v121_v5  ;;  %v222_v20 = vld [vmem:[%s428_s6] ss:$0 sm:$0xff] }
  0x1a   :  { %178 = vmatpush.msra.mxu2 %v154_v13 }
  0x1b   :  { %147 = vmatpush.msra.mxu1 %v120_v6 }
  0x1c   :  { %179 = vmatpush.msra.mxu2 %v153_v14 }
  0x94   :  { %v116_v9 = vpop.f32.mrf.mxu0 }
  0x95   :  { %v117_v10 = vadd.f32 %v220_v8, %v116_v9 }
  0x97   :  { %v119_v11 = vmax.f32 %v117_v10, 0.0 }
  0x99   :  { %211 = vmatmul.msk.f32.vlgmr.msra.gmra.mxu1 %vm128_vm1, %v119_v11 }
 0x116   :  { %v149_v16 = vpop.f32.mrf.mxu1 }
 0x117   :  { %v150_v17 = vadd.f32 %v221_v15, %v149_v16 }
 0x119   :  { %v152_v18 = vmax.f32 %v150_v17, 0.0 }
 0x11b   :  { %212 = vmatmul.msk.f32.vlgmr.msra.gmra.mxu2 %vm128_vm1, %v152_v18 }
 0x19e   :  { %v181_v21 = vpop.f32.mrf.mxu2 }
 0x19f   :  { %v182_v23 = vadd.f32 %v222_v20, %v181_v21 }
 0x1a1   :  { %v187_v24 = vmax.f32 %v182_v23, -20.0 }
 0x1a3   :  { %v188_v25 = vmin.f32 %v187_v24, 2.0 }
 0x1a5   :  { %v189_v26 = vsel %vm186_vm2, %v188_v25, %v182_v23 }
 0x1a6   :  { %190 = vst [vmem:[#allocation10] sm:$0xff] %v189_v26 }
 0x1a7   :  { %201 = dma.vmem_to_hbm [thread:$0]  %s197_s25, 128, %s199_s28, [#allocation4]  }
 0x1a8   :  { %349 = dma.done.wait [#allocation4], 128  }
 0x1a9   :  { %350 = vsyncadd [#allocation4], 4294967168 }
 0x1aa   :  { %206 = vsyncpa [#allocation3], 1 }
 0x1ab   :  { %207 = vsyncpa [#allocation6], 1 }
 0x1ac   :  { %208 = vsyncpa [#allocation9], 1 }
 0x1ad   :  { %209 = vsyncpa [#allocation4], 1 }

</bundles_post_ra>
